<compile_context>
chip_gen: v7x
topology: tpu7x:2x2x1
jax: 0.10.0
libtpu: 0.0.40
codegen_flags: <defaults>
</compile_context>

<pallas_src>
import functools

import jax
import jax.numpy as jnp
from jax import lax
from jax.experimental import pallas as pl
from jax.experimental.pallas import tpu as pltpu


def _round_up(x, m):
    return (x + m - 1) // m * m


def _cdiv(a, b):
    return -(-a // b)


def _cspn_kernel(kernel_ref, inp_ref, inp0_ref, out_ref, *,
                 ksize, tile_h, wp, halo, unroll):
    """One (batch, H-tile) grid step.

    kernel_ref : (1, K*K, TILE_H, Wp)        affinity weights (possibly bf16)
    inp_ref    : (1, 1, Hp + 2*halo, Wp)     full padded depth plane of batch b
    inp0_ref   : (1, 1, TILE_H, Wp)          sparse depth (replaces center tap)
    out_ref    : (1, 1, TILE_H, Wp)
    """
    p = ksize // 2
    mid = (ksize * ksize - 1) // 2
    n_strips = tile_h // 8

    # Row of the padded depth plane corresponding to output row 0 of this tile.
    r_base = pl.multiple_of(pl.program_id(1) * tile_h, 8) + halo

    def strip_body(s, carry):
        row0 = pl.multiple_of(s * 8, 8)             # row offset inside the tile
        # Center tap (sparse depth) initializes the accumulator: saves a zero
        # broadcast + add per strip and shortens the unrolled body.
        acc = (kernel_ref[0, mid, pl.ds(row0, 8), :].astype(jnp.float32)
               * inp0_ref[0, 0, pl.ds(row0, 8), :].astype(jnp.float32))
        idx = 0
        for ky in range(ksize):
            dy = ky - p
            # 8-row slab of the padded depth plane, shifted vertically by dy
            # (cheap sublane-shifted read; the 8-aligned zero halo in H provides
            # the vertical zero border).
            slab = inp_ref[0, 0, pl.ds(r_base + row0 + dy, 8), :].astype(jnp.float32)
            for kx in range(ksize):
                dx = kx - p
                if idx != mid:
                    if dx == 0:
                        val = slab
                    else:
                        # val[:, x] = slab[:, (x + dx) mod Wp]  (XLU roll, no mask):
                        #  * dx < 0: wrapped lanes read columns >= W of the zero-
                        #    padded input (since Wp - W >= p) -> correct zero border.
                        #  * dx > 0: no wrap for x < W (W - 1 + p <= Wp - 1); wrapped
                        #    garbage only lands in output columns >= W, sliced off.
                        val = pltpu.roll(slab, shift=(-dx) % wp, axis=1)
                    acc = acc + (kernel_ref[0, idx, pl.ds(row0, 8), :]
                                 .astype(jnp.float32) * val)
                idx += 1
        out_ref[0, 0, pl.ds(row0, 8), :] = acc.astype(out_ref.dtype)
        return carry

    lax.fori_loop(0, n_strips, strip_body, 0, unroll=unroll)


def _vmem_capacity_bytes():
    try:
        return int(getattr(pltpu.get_tpu_info(), "vmem_capacity_bytes", 64 << 20))
    except Exception:
        return 64 << 20  # conservative (v7x per-TC capacity) if detection fails


def cspn_accelerate(kernel, inp, inp0, kernel_size, *,
                    tile_h=None, weights_dtype=jnp.bfloat16,
                    vmem_budget_bytes=None):
    """Pallas implementation of CSPNAccelerate.forward.

    kernel : (bs, K*K, H, W)   affinity weights
    inp    : (bs, 1, H, W)     propagated depth
    inp0   : (bs, 1, H, W)     sparse depth (center-tap replacement)
    weights_dtype : dtype used to *stream* the affinity weights (bf16 halves the
        dominant HBM traffic; set to jnp.float32 for bit-exact f32 numerics).
    returns: (bs, 1, H, W)   in inp.dtype
    """
    bs, kk, h, w = kernel.shape
    assert kk == kernel_size * kernel_size
    assert kernel_size % 2 == 1, "CSPN uses odd kernel sizes"
    assert inp.shape == (bs, 1, h, w) and inp0.shape == (bs, 1, h, w)
    p = kernel_size // 2

    # Lane-dense width with >= p columns of zero padding on the right so rolled
    # taps never wrap real data into valid output columns (mask-free taps).
    wp = _round_up(w + p, 128)
    halo = _round_up(max(p, 1), 8)                  # 8-aligned zero halo in H

    k_bytes = jnp.dtype(weights_dtype).itemsize
    io_bytes = jnp.dtype(inp.dtype).itemsize
    cap = _vmem_capacity_bytes()

    if vmem_budget_bytes is None:
        # ~44-48 MB on v7x (64 MiB VMEM), ~96 MB on v5e/v6e (128 MiB VMEM).
        vmem_budget_bytes = min(cap * 3 // 4, 100 << 20)

    if tile_h is not None:
        th = min(_round_up(tile_h, 8), _round_up(h, 8))
    else:
        # Per-output-row VMEM (double-buffered): K^2 weight rows + inp0 + out.
        per_row = 2 * (kk * k_bytes + 2 * io_bytes) * wp
        # Resident full depth plane of one batch element (also double-buffered);
        # upper-bound hp by round_up(h,8) + max tile size.
        plane_rows = _round_up(h, 8) + 2 * halo + 256
        plane_bytes = 2 * plane_rows * wp * io_bytes
        avail = vmem_budget_bytes - plane_bytes - (4 << 20)
        th = max(8, (avail // per_row) // 8 * 8)
        th = min(th, 256, _round_up(h, 8))
        # Keep enough grid steps for balanced megacore sharding on v7x (2 TCs).
        while th > 8 and bs * _cdiv(h, th) < 8:
            th = max(8, _round_up(th // 2, 8))
        # TODO(synk): for very large K on v7x, a third "arbitrary" grid axis over
        # kk chunks (VMEM accumulator + pl.when init/finalize) would let th stay
        # large; not needed for the K/VMEM regimes exercised here.

    hp = _round_up(h, th)
    n_h = hp // th

    # Zero padding (right/bottom + H halo) reproduces the original zero-border
    # padding for every valid output pixel; extra rows/cols are sliced off below.
    kernel_p = jnp.pad(kernel.astype(weights_dtype),
                       ((0, 0), (0, 0), (0, hp - h), (0, wp - w)))
    inp0_p = jnp.pad(inp0, ((0, 0), (0, 0), (0, hp - h), (0, wp - w)))
    inp_p = jnp.pad(inp, ((0, 0), (0, 0), (halo, hp - h + halo), (0, wp - w)))

    n_strips = th // 8
    unroll = 2 if (kernel_size <= 3 and n_strips % 2 == 0) else 1
    body = functools.partial(_cspn_kernel, ksize=kernel_size, tile_h=th,
                             wp=wp, halo=halo, unroll=unroll)

    # Scoped VMEM: actual double-buffered block footprint plus slack, capped at
    # the physical capacity of this generation.
    vmem_need = 2 * (kk * th * wp * k_bytes
                     + (hp + 2 * halo) * wp * io_bytes
                     + 2 * th * wp * io_bytes) + (2 << 20)
    vmem_limit = int(min(max(vmem_need, 16 << 20), cap))

    cost = pl.CostEstimate(
        flops=2 * kk * bs * h * w,
        transcendentals=0,
        bytes_accessed=bs * h * w * (kk * k_bytes + 3 * io_bytes))

    out_p = pl.pallas_call(
        body,
        out_shape=jax.ShapeDtypeStruct((bs, 1, hp, wp), inp.dtype),
        grid_spec=pltpu.PrefetchScalarGridSpec(
            num_scalar_prefetch=0,
            grid=(bs, n_h),
            in_specs=[
                pl.BlockSpec((1, kk, th, wp), lambda b, i: (b, 0, i, 0)),
                # Full padded depth plane of batch b (single channel, small).
                # Its block index is independent of i, so the pipeline keeps it
                # resident across all H tiles of a batch element; its footprint
                # is subtracted from the tile_h VMEM budget above.
                pl.BlockSpec((1, 1, hp + 2 * halo, wp), lambda b, i: (b, 0, 0, 0)),
                pl.BlockSpec((1, 1, th, wp), lambda b, i: (b, 0, i, 0)),
            ],
            out_specs=pl.BlockSpec((1, 1, th, wp), lambda b, i: (b, 0, i, 0)),
        ),
        compiler_params=pltpu.CompilerParams(
            dimension_semantics=("parallel", "parallel"),
            vmem_limit_bytes=vmem_limit),
        cost_estimate=cost,
    )(kernel_p, inp_p, inp0_p)

    return out_p[:, :, :h, :w]


def _reference(kernel, inp, inp0, kernel_size):
    """Plain-JAX reference replicating the F.unfold-based PyTorch forward."""
    bs, kk, h, w = kernel.shape
    p = kernel_size // 2
    mid = (kernel_size * kernel_size - 1) // 2
    inp_pad = jnp.pad(inp, ((0, 0), (0, 0), (p, p), (p, p)))
    taps = []
    idx = 0
    for ky in range(kernel_size):
        for kx in range(kernel_size):
            if idx == mid:
                taps.append(inp0[:, 0])
            else:
                taps.append(inp_pad[:, 0, ky:ky + h, kx:kx + w])
            idx += 1
    taps = jnp.stack(taps, axis=1)          # (bs, K*K, H, W)
    out = (taps * kernel).sum(axis=1)
    return out[:, None, :, :]


if __name__ == "__main__":
    key = jax.random.PRNGKey(0)

    configs = [
        # (bs, ksize, h, w, weights_dtype)
        (2, 3, 16, 16, jnp.float32),     # small, f32 weights, bit-exact path
        (1, 5, 40, 150, jnp.float32),    # multi-tile in H, lane padding, K=5
        (1, 3, 24, 40, jnp.bfloat16),    # bf16 weight stream (default fast path)
        (1, 7, 16, 130, jnp.bfloat16),   # K=7: larger roll shifts, wide taps
    ]
    for bs, ksize, h, w, wdtype in configs:
        key, k_key, i_key, i0_key = jax.random.split(key, 4)
        kernel = jax.random.normal(k_key, (bs, ksize * ksize, h, w), dtype=jnp.float32)
        inp = jax.random.normal(i_key, (bs, 1, h, w), dtype=jnp.float32)
        inp0 = jax.random.normal(i0_key, (bs, 1, h, w), dtype=jnp.float32)

        out = jax.block_until_ready(
            cspn_accelerate(kernel, inp, inp0, ksize, weights_dtype=wdtype))
        # Reference sees the same weight quantization so f32-accuracy comparison
        # is valid for both the f32 and bf16 weight-stream paths.
        ref = _reference(kernel.astype(wdtype).astype(jnp.float32), inp, inp0, ksize)
        assert out.shape == (bs, 1, h, w)
        assert jnp.allclose(out, ref, atol=1e-4, rtol=1e-4), (
            float(jnp.max(jnp.abs(out - ref))))

    print("KERNEL_OK")
</pallas_src>

<mosaic_0001>
module attributes {stable_mosaic.version = 11 : i64} {
  func.func @_cspn_kernel(%arg0: i32, %arg1: i32, %arg2: memref<1x9x8x128xf32, #tpu.memory_space<vmem>>, %arg3: memref<1x1x32x128xf32, #tpu.memory_space<vmem>>, %arg4: memref<1x1x8x128xf32, #tpu.memory_space<vmem>>, %arg5: memref<1x1x8x128xf32, #tpu.memory_space<vmem>>) attributes {dimension_semantics = [#tpu.dimension_semantics<parallel>, #tpu.dimension_semantics<parallel>], iteration_bounds = array<i64: 2, 2>, scalar_prefetch = 0 : i64, scratch_operands = 0 : i64, tpu.core_type = #tpu.core_type<tc>, window_params = [{transform_indices = @transform_0, window_bounds = array<i64: 1, 9, 8, 128>}, {transform_indices = @transform_1, window_bounds = array<i64: 1, 1, 32, 128>}, {transform_indices = @transform_2, window_bounds = array<i64: 1, 1, 8, 128>}, {transform_indices = @transform_3, window_bounds = array<i64: 1, 1, 8, 128>}]} {
    %c8_i32 = arith.constant 8 : i32
    %0 = arith.muli %arg1, %c8_i32 : i32
    %1 = tpu.assume_multiple %0, 8 : i32
    %c8_i32_0 = arith.constant 8 : i32
    %2 = arith.addi %1, %c8_i32_0 : i32
    %c0_i32 = arith.constant 0 : i32
    %c8_i32_1 = arith.constant 8 : i32
    %3 = arith.muli %c0_i32, %c8_i32_1 : i32
    %4 = tpu.assume_multiple %3, 8 : i32
    %c0 = arith.constant 0 : index
    %c4 = arith.constant 4 : index
    %5 = arith.index_cast %4 : i32 to index
    %c0_2 = arith.constant 0 : index
    %6 = vector.load %arg2[%c0, %c4, %5, %c0_2] : memref<1x9x8x128xf32, #tpu.memory_space<vmem>>, vector<1x1x8x128xf32>
    %7 = vector.shape_cast %6 : vector<1x1x8x128xf32> to vector<8x128xf32>
    %c0_3 = arith.constant 0 : index
    %c0_4 = arith.constant 0 : index
    %8 = arith.index_cast %4 : i32 to index
    %c0_5 = arith.constant 0 : index
    %9 = vector.load %arg4[%c0_3, %c0_4, %8, %c0_5] : memref<1x1x8x128xf32, #tpu.memory_space<vmem>>, vector<1x1x8x128xf32>
    %10 = vector.shape_cast %9 : vector<1x1x8x128xf32> to vector<8x128xf32>
    %11 = arith.mulf %7, %10 : vector<8x128xf32>
    %12 = arith.addi %2, %4 : i32
    %c-1_i32 = arith.constant -1 : i32
    %13 = arith.addi %12, %c-1_i32 : i32
    %c0_6 = arith.constant 0 : index
    %c0_7 = arith.constant 0 : index
    %14 = arith.index_cast %13 : i32 to index
    %c0_8 = arith.constant 0 : index
    %15 = vector.load %arg3[%c0_6, %c0_7, %14, %c0_8] : memref<1x1x32x128xf32, #tpu.memory_space<vmem>>, vector<1x1x8x128xf32>
    %16 = vector.shape_cast %15 : vector<1x1x8x128xf32> to vector<8x128xf32>
    %c1_i32 = arith.constant 1 : i32
    %17 = tpu.dynamic_rotate %16 by %c1_i32 dim 1 : vector<8x128xf32>, i32 -> vector<8x128xf32>
    %c0_9 = arith.constant 0 : index
    %c0_10 = arith.constant 0 : index
    %18 = arith.index_cast %4 : i32 to index
    %c0_11 = arith.constant 0 : index
    %19 = vector.load %arg2[%c0_9, %c0_10, %18, %c0_11] : memref<1x9x8x128xf32, #tpu.memory_space<vmem>>, vector<1x1x8x128xf32>
    %20 = vector.shape_cast %19 : vector<1x1x8x128xf32> to vector<8x128xf32>
    %21 = arith.mulf %20, %17 : vector<8x128xf32>
    %22 = arith.addf %11, %21 : vector<8x128xf32>
    %c0_12 = arith.constant 0 : index
    %c1 = arith.constant 1 : index
    %23 = arith.index_cast %4 : i32 to index
    %c0_13 = arith.constant 0 : index
    %24 = vector.load %arg2[%c0_12, %c1, %23, %c0_13] : memref<1x9x8x128xf32, #tpu.memory_space<vmem>>, vector<1x1x8x128xf32>
    %25 = vector.shape_cast %24 : vector<1x1x8x128xf32> to vector<8x128xf32>
    %26 = arith.mulf %25, %16 : vector<8x128xf32>
    %27 = arith.addf %22, %26 : vector<8x128xf32>
    %c127_i32 = arith.constant 127 : i32
    %28 = tpu.dynamic_rotate %16 by %c127_i32 dim 1 : vector<8x128xf32>, i32 -> vector<8x128xf32>
    %c0_14 = arith.constant 0 : index
    %c2 = arith.constant 2 : index
    %29 = arith.index_cast %4 : i32 to index
    %c0_15 = arith.constant 0 : index
    %30 = vector.load %arg2[%c0_14, %c2, %29, %c0_15] : memref<1x9x8x128xf32, #tpu.memory_space<vmem>>, vector<1x1x8x128xf32>
    %31 = vector.shape_cast %30 : vector<1x1x8x128xf32> to vector<8x128xf32>
    %32 = arith.mulf %31, %28 : vector<8x128xf32>
    %33 = arith.addf %27, %32 : vector<8x128xf32>
    %34 = arith.addi %2, %4 : i32
    %c0_i32_16 = arith.constant 0 : i32
    %35 = arith.addi %34, %c0_i32_16 : i32
    %c0_17 = arith.constant 0 : index
    %c0_18 = arith.constant 0 : index
    %36 = arith.index_cast %35 : i32 to index
    %c0_19 = arith.constant 0 : index
    %37 = vector.load %arg3[%c0_17, %c0_18, %36, %c0_19] : memref<1x1x32x128xf32, #tpu.memory_space<vmem>>, vector<1x1x8x128xf32>
    %38 = vector.shape_cast %37 : vector<1x1x8x128xf32> to vector<8x128xf32>
    %c1_i32_20 = arith.constant 1 : i32
    %39 = tpu.dynamic_rotate %38 by %c1_i32_20 dim 1 : vector<8x128xf32>, i32 -> vector<8x128xf32>
    %c0_21 = arith.constant 0 : index
    %c3 = arith.constant 3 : index
    %40 = arith.index_cast %4 : i32 to index
    %c0_22 = arith.constant 0 : index
    %41 = vector.load %arg2[%c0_21, %c3, %40, %c0_22] : memref<1x9x8x128xf32, #tpu.memory_space<vmem>>, vector<1x1x8x128xf32>
    %42 = vector.shape_cast %41 : vector<1x1x8x128xf32> to vector<8x128xf32>
    %43 = arith.mulf %42, %39 : vector<8x128xf32>
    %44 = arith.addf %33, %43 : vector<8x128xf32>
    %c127_i32_23 = arith.constant 127 : i32
    %45 = tpu.dynamic_rotate %38 by %c127_i32_23 dim 1 : vector<8x128xf32>, i32 -> vector<8x128xf32>
    %c0_24 = arith.constant 0 : index
    %c5 = arith.constant 5 : index
    %46 = arith.index_cast %4 : i32 to index
    %c0_25 = arith.constant 0 : index
    %47 = vector.load %arg2[%c0_24, %c5, %46, %c0_25] : memref<1x9x8x128xf32, #tpu.memory_space<vmem>>, vector<1x1x8x128xf32>
    %48 = vector.shape_cast %47 : vector<1x1x8x128xf32> to vector<8x128xf32>
    %49 = arith.mulf %48, %45 : vector<8x128xf32>
    %50 = arith.addf %44, %49 : vector<8x128xf32>
    %51 = arith.addi %2, %4 : i32
    %c1_i32_26 = arith.constant 1 : i32
    %52 = arith.addi %51, %c1_i32_26 : i32
    %c0_27 = arith.constant 0 : index
    %c0_28 = arith.constant 0 : index
    %53 = arith.index_cast %52 : i32 to index
    %c0_29 = arith.constant 0 : index
    %54 = vector.load %arg3[%c0_27, %c0_28, %53, %c0_29] : memref<1x1x32x128xf32, #tpu.memory_space<vmem>>, vector<1x1x8x128xf32>
    %55 = vector.shape_cast %54 : vector<1x1x8x128xf32> to vector<8x128xf32>
    %c1_i32_30 = arith.constant 1 : i32
    %56 = tpu.dynamic_rotate %55 by %c1_i32_30 dim 1 : vector<8x128xf32>, i32 -> vector<8x128xf32>
    %c0_31 = arith.constant 0 : index
    %c6 = arith.constant 6 : index
    %57 = arith.index_cast %4 : i32 to index
    %c0_32 = arith.constant 0 : index
    %58 = vector.load %arg2[%c0_31, %c6, %57, %c0_32] : memref<1x9x8x128xf32, #tpu.memory_space<vmem>>, vector<1x1x8x128xf32>
    %59 = vector.shape_cast %58 : vector<1x1x8x128xf32> to vector<8x128xf32>
    %60 = arith.mulf %59, %56 : vector<8x128xf32>
    %61 = arith.addf %50, %60 : vector<8x128xf32>
    %c0_33 = arith.constant 0 : index
    %c7 = arith.constant 7 : index
    %62 = arith.index_cast %4 : i32 to index
    %c0_34 = arith.constant 0 : index
    %63 = vector.load %arg2[%c0_33, %c7, %62, %c0_34] : memref<1x9x8x128xf32, #tpu.memory_space<vmem>>, vector<1x1x8x128xf32>
    %64 = vector.shape_cast %63 : vector<1x1x8x128xf32> to vector<8x128xf32>
    %65 = arith.mulf %64, %55 : vector<8x128xf32>
    %66 = arith.addf %61, %65 : vector<8x128xf32>
    %c127_i32_35 = arith.constant 127 : i32
    %67 = tpu.dynamic_rotate %55 by %c127_i32_35 dim 1 : vector<8x128xf32>, i32 -> vector<8x128xf32>
    %c0_36 = arith.constant 0 : index
    %c8 = arith.constant 8 : index
    %68 = arith.index_cast %4 : i32 to index
    %c0_37 = arith.constant 0 : index
    %69 = vector.load %arg2[%c0_36, %c8, %68, %c0_37] : memref<1x9x8x128xf32, #tpu.memory_space<vmem>>, vector<1x1x8x128xf32>
    %70 = vector.shape_cast %69 : vector<1x1x8x128xf32> to vector<8x128xf32>
    %71 = arith.mulf %70, %67 : vector<8x128xf32>
    %72 = arith.addf %66, %71 : vector<8x128xf32>
    %c0_38 = arith.constant 0 : index
    %c0_39 = arith.constant 0 : index
    %73 = arith.index_cast %4 : i32 to index
    %c0_40 = arith.constant 0 : index
    %74 = vector.load %arg5[%c0_38, %c0_39, %73, %c0_40] : memref<1x1x8x128xf32, #tpu.memory_space<vmem>>, vector<1x1x8x128xf32>
    %75 = vector.shape_cast %74 : vector<1x1x8x128xf32> to vector<8x128xf32>
    %76 = vector.shape_cast %72 : vector<8x128xf32> to vector<1x1x8x128xf32>
    tpu.vector_store %arg5[%c0_38, %c0_39, %73, %c0_40], %76 {strides = array<i32>} : memref<1x1x8x128xf32, #tpu.memory_space<vmem>>, vector<1x1x8x128xf32>,
    %c1_i32_41 = arith.constant 1 : i32
    return
  }
  func.func @transform_0(%arg0: i32, %arg1: i32) -> (i32, i32, i32, i32) {
    %c0_i32 = arith.constant 0 : i32
    %c0_i32_0 = arith.constant 0 : i32
    %c0_i32_1 = arith.constant 0 : i32
    return %arg0, %c0_i32, %arg1, %c0_i32_0 : i32, i32, i32, i32
  }
  func.func @transform_1(%arg0: i32, %arg1: i32) -> (i32, i32, i32, i32) {
    %c0_i32 = arith.constant 0 : i32
    %c0_i32_0 = arith.constant 0 : i32
    %c0_i32_1 = arith.constant 0 : i32
    %c0_i32_2 = arith.constant 0 : i32
    return %arg0, %c0_i32, %c0_i32_0, %c0_i32_1 : i32, i32, i32, i32
  }
  func.func @transform_2(%arg0: i32, %arg1: i32) -> (i32, i32, i32, i32) {
    %c0_i32 = arith.constant 0 : i32
    %c0_i32_0 = arith.constant 0 : i32
    %c0_i32_1 = arith.constant 0 : i32
    return %arg0, %c0_i32, %arg1, %c0_i32_0 : i32, i32, i32, i32
  }
  func.func @transform_3(%arg0: i32, %arg1: i32) -> (i32, i32, i32, i32) {
    %c0_i32 = arith.constant 0 : i32
    %c0_i32_0 = arith.constant 0 : i32
    %c0_i32_1 = arith.constant 0 : i32
    return %arg0, %c0_i32, %arg1, %c0_i32_0 : i32, i32, i32, i32
  }
}

</mosaic_0001>

<bundles_post_ra>
// kernel: tpu_custom_call.1
= control target key start
LH: loop header
LB: loop body
LE: loop exit
PB: predicated region body
PF: predicated region fallthrough
CT: control target
= control target key end

     0   :  { %s1276_s0 = inlined_call_operand.hbm [shape: f32[2,9,16,128], index: 0, kind: input, shape index: {}]   ;;  %s1277_s1 = inlined_call_operand.hbm [shape: f32[2,1,32,128], index: 1, kind: input, shape index: {}]   ;;  %s1278_s2 = inlined_call_operand.hbm [shape: f32[2,1,16,128], index: 2, kind: input, shape index: {}]   ;;  %s1279_s3 = inlined_call_operand.hbm [shape: f32[2,1,16,128], index: 3, kind: output, shape index: {}]  }
   0x1   :  { %1299 = sst [smem:[#allocation24_spill]] %s1276_s0 }
   0x2   :  { %1300 = sst [smem:[#allocation25_spill]] %s1277_s1 }
   0x3   :  { %1301 = sst [smem:[#allocation26_spill]] %s1279_s3 }
   0x4   :  { %8 = vsyncpa [#allocation3], 0 }
   0x5   :  { %10 = vsyncpa [#allocation3 + $0x1], 0 }
   0x6   :  { %11 = vsyncpa [#allocation6], 0 }
   0x7   :  { %13 = vsyncpa [#allocation6 + $0x1], 0 }
   0x8   :  { %14 = vsyncpa [#allocation4], 0 }
   0x9   :  { %16 = vsyncpa [#allocation4 + $0x1], 0  ;;  %s920_s12 = smov 0   ;;  %s922_s13 = smov 0  }
   0xa   :  { %s924_s14 = smov 0   ;;  %s926_s15 = smov 0  }
   0xb   :  { %s928_s16 = smov 0   ;;  %s930_s17 = smov 0  }
   0xc   :  { %s932_s18 = smov 0   ;;  %s934_s19 = smov 0  }
   0xd   :  { %s936_s20 = smov 0   ;;  %s938_s21 = smov 0  }
   0xe   :  { %s940_s22 = smov 0  }
   0xf LB: > { %1302 = sst [smem:[#allocation13_spill]] %s857_s14  ;;  %s974_s23 = sadd.s32 4294967295, %s889_s22   ;;  %s889_s22 = sphi %s940_s22, %s22_s22   ;;  %s885_s21 = sphi %s938_s21, %s1357_s21   ;;  %s881_s20 = sphi %s936_s20, %s1356_s20   ;;  %s877_s19 = sphi %s934_s19, %s1355_s19   ;;  %s873_s18 = sphi %s932_s18, %s1354_s18   ;;  %s869_s17 = sphi %s930_s17, %s1347_s17   ;;  %s865_s16 = sphi %s928_s16, %s1353_s16   ;;  %s861_s15 = sphi %s926_s15, %s1352_s15   ;;  %s857_s14 = sphi %s924_s14, %s1345_s14   ;;  %s853_s13 = sphi %s922_s13, %s1351_s13   ;;  %s849_s12 = sphi %s920_s12, %s1350_s12  }
  0x10   : > { %1303 = sst [smem:[#allocation14_spill]] %s861_s15  ;;  %s34_s24 = sadd.s32 1, %s885_s21 }
  0x11   : > { %1304 = sst [smem:[#allocation15_spill]] %s869_s17  ;;  %p1282_p0 = scmp.eq.s32.totalorder %s889_s22, 0 }
  0x12   : > { %1305 = sst [smem:[#allocation16_spill]] %s877_s19  ;;  %p1281_p1 = scmp.eq.s32.totalorder %s974_s23, 0 }
  0x13   : > { %1306 = sst [smem:[#allocation17_spill]] %s889_s22  ;;  %p76_p2 = scmp.ne.s32.totalorder %s857_s14, %s853_s13 }
  0x14   : > { %p82_p3 = scmp.ne.s32.totalorder %s853_s13, %s849_s12  ;;  %p1280_p7 = scmp.lt.s32.totalorder %s889_s22, 4 }
  0x15   : > { %p78_p5 = por %p76_p2, %p1282_p0  ;;  %s184_s27 = sand.u32 1, %s889_s22  }
  0x16   : > { %p988_p6 = por %p82_p3, %p1281_p1  ;;  %s186_s28 = sand.u32 1, %s857_s14  }
  0x17   : > { %s519_s29 = sshll.u32 %s186_s28, 5  ;;  %s548_s30 = sshll.u32 %s885_s21, 9 }
  0x18   : > { %s1307_s26 = scalar_select %p988_p6, 1, 0 }
  0x19   : > { %s1308_s1 = sld [smem:[#allocation25_spill]]  ;;  %s188_s7 = scalar_lea.vmem [#allocation5], %s519_s29 }
  0x1a   : > { %s195_s8 = sshll.u32 %s188_s7, 4  ;;  %p1005_p8 = pnand %p1280_p7, %p78_p5  ;;  %s1001_s8 = int_to_ptr.vmem [resolvable:$true] %s195_s8 }
  0x1b   : > { %s1011_s10 = scalar_lea.sflag [#allocation6], %s184_s27 }
  0x1c   : > { %p671_p12 = pneg %p1005_p8 }
  0x1f   : > { %s999_s6 = scalar_lea.hbm %s1308_s1, %s548_s30  ;;  %s674_s29 = scalar_lea.hbm %s1308_s1, 1024 }
  0x20   : > { %s669_s11 = scalar_lea.hbm %s999_s6, 512  ;;  %p675_p3 = scmp.lt.u32.totalorder %s999_s6, %s1308_s1 }
  0x21   : > { %p670_p11 = scmp.ne.s32.totalorder %s999_s6, %s669_s11  ;;  %p676_p5 = scmp.lt.u32.totalorder %s674_s29, %s669_s11 }
  0x22   : > { %p678_p4 = scmp.lt.u32.totalorder %s669_s11, %s999_s6 }
  0x23   : > { %p672_p13 = pnand %p671_p12, %p670_p11  ;;  %p677_p7 = por %p676_p5, %p675_p3 }
  0x25   : > { %p673_p2 = pneg %p672_p13  ;;  %p679_p1 = por %p678_p4, %p677_p7 }
  0x27   : > { %p680_p0 = pnand %p679_p1, %p673_p2 }
  0x29   : > { %683 = shalt.err (!%p680_p0)
}
  0x2a   : > { %s684_s27 = scalar_lea.vmem %s1001_s8, 512  ;;  %s891_s5 = smov [#allocation5]  }
  0x2b   : > { %p685_p11 = scmp.ne.s32.totalorder %s1001_s8, %s684_s27  ;;  %s689_s7 = sshll.u32 %s891_s5, 4  ;;  %s690_s7 = int_to_ptr.vmem [resolvable:$false] %s689_s7 }
  0x2c   : > { %s691_s12 = scalar_lea.vmem %s690_s7, 1024  ;;  %p692_p10 = scmp.lt.s32.totalorder %s1001_s8, %s690_s7 }
  0x2d   : > { %p687_p13 = pnand %p685_p11, %p671_p12  ;;  %p693_p3 = scmp.lt.s32.totalorder %s691_s12, %s684_s27 }
  0x2f   : > { %p688_p9 = pneg %p687_p13  ;;  %p694_p5 = por %p693_p3, %p692_p10 }
  0x31   : > { %p695_p4 = pnand %p694_p5, %p688_p9 }
  0x33   : > { %698 = shalt.err (!%p695_p4)
}
  0x34   : > { %s1283_s11 = smov 128   ;;  %s1284_s28 = smov 8  }
  0x35   : > { %566 = dma.hbm_to_vmem [thread:$0]  (!%p1005_p8), %s999_s6, 512, %s1001_s8, %s1011_s10, %s1283_s11, %s1283_s11, %s1284_s28  }
  0x36   : > { %p1310_p0 = scmp.lt.s32.totalorder %s889_s22, 5  ;;  %p1311_p1 = scmp.ge.s32.totalorder %s889_s22, 1 }
  0x37   : > { %s515_s30 = sadd.s32 4294967294, %s889_s22   ;;  %s31_s4 = sadd.s32 1, %s881_s20 }
  0x38   : > { %p1046_p7 = pnand %p1311_p1, %p1310_p0  ;;  %p32_p9 = scmp.ge.s32.totalorder %s31_s4, 2 }
  0x39   : > { %s43_s27 = sadd.s32 1, %s869_s17  ;;  %p50_p10 = scmp.ne.s32.totalorder %s869_s17, %s865_s16 }
  0x3a   : > { %s1312_s29 = scalar_select %p1046_p7, 1, 0 }
  0x3b   : > { %p56_p12 = scmp.ne.s32.totalorder %s865_s16, %s861_s15  ;;  %s1359_s4 = smov (%p32_p9, %s31_s4), 0 }
  0x3c   : > { %1313 = sst [smem:[#allocation18_spill]] %s1359_s4  ;;  %s1361_s24 = smov (!%p32_p9, %s34_s24), %s885_s21 }
  0x3d   : > { %s39_s6 = ssub.s32 %s881_s20, %s1359_s4  ;;  %p1314_p8 = scmp.eq.s32.totalorder %s889_s22, 0 }
  0x3e   : > { %p36_p11 = scmp.ge.s32.totalorder %s1361_s24, 2  ;;  %p1316_p13 = scmp.eq.s32.totalorder %s974_s23, 0 }
  0x3f   : > { %p1066_p2 = por %p1314_p8, %p50_p10  ;;  %p1318_p5 = scmp.eq.s32.totalorder %s974_s23, 3 }
  0x40   : > { %p1072_p3 = por %p1316_p13, %p56_p12  ;;  %p142_p0 = scmp.eq.s32.totalorder %s515_s30, 3 }
  0x41   : > { %p1078_p4 = por %p1318_p5, %p50_p10  ;;  %s1363_s24 = smov (%p36_p11, %s1361_s24), 0 }
  0x42   : > { %s1317_s9 = scalar_select %p1072_p3, 1, 0 }
  0x43   : > { %s1319_s5 = scalar_select %p1078_p4, 1, 0 }
  0x44   : > { %1321 = sst [smem:[#allocation20_spill]] %s1363_s24  ;;  %p1084_p1 = por %p142_p0, %p56_p12 }
  0x45   : > { %1320 = sst [smem:[#allocation19_spill]] %s1319_s5  ;;  %s1089_s12 = sand.u32 1, %s869_s17  }
  0x46   : > { %s1322_s7 = scalar_select %p1084_p1, 1, 0 }
  0x47   : > { %s38_s11 = ssub.s32 %s885_s21, %s1363_s24  ;;  %s549_s25 = smul.u32 72, %s1089_s12 }
  0x48   : > { %1323 = sst [smem:[#allocation21_spill]] %s1322_s7  ;;  %s40_s28 = sor.u32 %s39_s6, %s38_s11 }
  0x49   : > { %p67_p9 = scmp.eq.s32.totalorder %s38_s11, 0  ;;  %p41_p10 = scmp.eq.s32.totalorder %s40_s28, 0 }
  0x4a   : > { %s1324_s1 = sadd.s32 1, %s857_s14  ;;  %s550_s15 = smul.u32 18, %s885_s21 }
  0x4b   : > { %s1097_s4 = scalar_select %p67_p9, %s857_s14, %s1324_s1  }
  0x4c   : > { %s1100_s30 = scalar_select %p41_p10, %s869_s17, %s43_s27  }
  0x4d   : > { %1325 = sst [smem:[#allocation22_spill]] %s1097_s4  ;;  %s166_s3 = scalar_lea.vmem [#allocation2], %s549_s25 }
  0x4e   : > { %1326 = sst [smem:[#allocation23_spill]] %s1100_s30  ;;  %s174_s5 = sshll.u32 %s166_s3, 4  ;;  %s1112_s5 = int_to_ptr.vmem [resolvable:$true] %s174_s5 }
  0x4f   : > { %p1327_p12 = scmp.lt.s32.totalorder %s889_s22, 4  ;;  %s171_s6 = sadd.s32 %s881_s20, %s550_s15 }
  0x50   : > { %s518_s11 = sshll.u32 %s171_s6, 7  ;;  %s1329_s0 = sld [smem:[#allocation24_spill]] }
  0x51   : > { %p1107_p8 = pnand %p1327_p12, %p1066_p2  ;;  %s163_s3 = scalar_lea.sflag [#allocation3], %s1089_s12 }
  0x53   : > { %p701_p11 = pneg %p1107_p8 }
  0x56   : > { %s1117_s27 = scalar_lea.hbm %s1329_s0, %s518_s11  ;;  %s704_s6 = scalar_lea.hbm %s1329_s0, 4608 }
  0x57   : > { %s699_s25 = scalar_lea.hbm %s1117_s27, 1152  ;;  %p705_p0 = scmp.lt.u32.totalorder %s1117_s27, %s1329_s0 }
  0x58   : > { %p700_p2 = scmp.ne.s32.totalorder %s1117_s27, %s699_s25  ;;  %p706_p9 = scmp.lt.u32.totalorder %s704_s6, %s699_s25 }
  0x59   : > { %p708_p12 = scmp.lt.u32.totalorder %s699_s25, %s1117_s27 }
  0x5a   : > { %p702_p13 = pnand %p701_p11, %p700_p2  ;;  %p707_p10 = por %p706_p9, %p705_p0 }
  0x5c   : > { %p703_p5 = pneg %p702_p13  ;;  %p709_p1 = por %p708_p12, %p707_p10 }
  0x5e   : > { %p710_p4 = pnand %p709_p1, %p703_p5 }
  0x60   : > { %713 = shalt.err (!%p710_p4)
}
  0x61   : > { %s714_s1 = scalar_lea.vmem %s1112_s5, 1152  ;;  %s894_s15 = smov [#allocation2]  }
  0x62   : > { %p715_p2 = scmp.ne.s32.totalorder %s1112_s5, %s714_s1  ;;  %s719_s8 = sshll.u32 %s894_s15, 4  ;;  %s720_s8 = int_to_ptr.vmem [resolvable:$false] %s719_s8 }
  0x63   : > { %s721_s28 = scalar_lea.vmem %s720_s8, 2304  ;;  %p722_p3 = scmp.lt.s32.totalorder %s1112_s5, %s720_s8 }
  0x64   : > { %p717_p13 = pnand %p715_p2, %p701_p11  ;;  %p723_p0 = scmp.lt.s32.totalorder %s721_s28, %s714_s1 }
  0x66   : > { %p718_p6 = pneg %p717_p13  ;;  %p724_p9 = por %p723_p0, %p722_p3 }
  0x68   : > { %p725_p10 = pnand %p724_p9, %p718_p6 }
  0x6a   : > { %728 = shalt.err (!%p725_p10)
}
  0x6b   : > { %s895_s25 = smov 256   ;;  %s1330_s6 = smov 8  }
  0x6c   : > { %s1331_s11 = smov 128   ;;  %s522_s15 = sshll.u32 %s1089_s12, 3 }
  0x6d   : > { %563 = dma.hbm_to_vmem [thread:$0]  (!%p1107_p8), %s1117_s27, 1152, %s1112_s5, %s163_s3, %s895_s25, %s1331_s11, %s1330_s6  }
  0x6e   : > { %s523_s8 = sshll.u32 %s885_s21, 1  ;;  %s209_s0 = scalar_lea.vmem [#allocation7], %s522_s15 }
  0x6f   : > { %s214_s1 = sadd.s32 %s881_s20, %s523_s8  ;;  %s218_s24 = sshll.u32 %s209_s0, 4  ;;  %s219_s24 = int_to_ptr.vmem [resolvable:$true] %s218_s24 }
  0x70   : > { %s524_s28 = sshll.u32 %s214_s1, 7  ;;  %s734_s5 = scalar_lea.hbm %s1278_s2, 512 }
  0x71   : > { %s216_s4 = scalar_lea.hbm %s1278_s2, %s524_s28 }
  0x72   : > { %s729_s14 = scalar_lea.hbm %s216_s4, 128  ;;  %p735_p1 = scmp.lt.u32.totalorder %s216_s4, %s1278_s2 }
  0x73   : > { %p730_p6 = scmp.ne.s32.totalorder %s216_s4, %s729_s14  ;;  %p736_p5 = scmp.lt.u32.totalorder %s734_s5, %s729_s14 }
  0x74   : > { %p738_p2 = scmp.lt.u32.totalorder %s729_s14, %s216_s4 }
  0x75   : > { %p732_p3 = pnand %p730_p6, %p701_p11  ;;  %p737_p12 = por %p736_p5, %p735_p1 }
  0x77   : > { %p733_p4 = pneg %p732_p3  ;;  %p739_p13 = por %p738_p2, %p737_p12 }
  0x79   : > { %p740_p0 = pnand %p739_p13, %p733_p4 }
  0x7b   : > { %743 = shalt.err (!%p740_p0)
}
  0x7c   : > { %s744_s0 = scalar_lea.vmem %s219_s24, 128  ;;  %s896_s17 = smov [#allocation7]  }
  0x7d   : > { %p745_p9 = scmp.ne.s32.totalorder %s219_s24, %s744_s0  ;;  %s749_s19 = sshll.u32 %s896_s17, 4  ;;  %s750_s19 = int_to_ptr.vmem [resolvable:$false] %s749_s19 }
  0x7e   : > { %s751_s22 = scalar_lea.vmem %s750_s19, 256  ;;  %p752_p3 = scmp.lt.s32.totalorder %s219_s24, %s750_s19 }
  0x7f   : > { %p747_p10 = pnand %p745_p9, %p701_p11  ;;  %p753_p7 = scmp.lt.s32.totalorder %s751_s22, %s744_s0 }
  0x81   : > { %p748_p6 = pneg %p747_p10  ;;  %p754_p1 = por %p753_p7, %p752_p3 }
  0x83   : > { %p755_p5 = pnand %p754_p1, %p748_p6 }
  0x85   : > { %758 = shalt.err (!%p755_p5)
}
  0x86   : > { %569 = dma.hbm_to_vmem [thread:$0]  (!%p1107_p8), %s216_s4, 128, %s219_s24, %s1011_s10  }
  0x87   : > { %p1332_p4 = scmp.ne.s32.totalorder %s1312_s29, 0 }
  0x88   : > { %s1173_s14 = sand.u32 (!%p1332_p4), 1, %s865_s16   ;;  %p1333_p7 = scmp.ne.s32.totalorder (!%p1332_p4), %s1317_s9, 0 }
  0x89   : > { %227 = sbr.rel (%p1332_p4) target bundleno = 303 (0x12f), region = 32  ;;  %s230_s3 = scalar_lea.sflag (!%p1332_p4), [#allocation3], %s1173_s14 }
  0x8a   : > { %s551_s30 = smul.u32 (!%p1332_p4), 72, %s1173_s14 }
  0x8c   : > { %s1177_s25 = scalar_lea.vmem (!%p1332_p4), [#allocation2], %s551_s30 }
  0x90   : > { %832 = dma.done.wait (%p1333_p7), %s230_s3, 1152  }
  0x91   : > { %834 = vsyncadd (%p1333_p7), %s230_s3, 4294966144  ;;  %s238_s24 = sand.u32 1, %s974_s23   ;;  %s240_s10 = sand.u32 1, %s853_s13  }
  0x92   : > { %s526_s29 = sshll.u32 %s240_s10, 5  ;;  %s239_s4 = scalar_lea.sflag [#allocation6], %s238_s24 }
  0x93   : > { %s242_s7 = scalar_lea.vmem [#allocation5], %s526_s29  ;;  %p1334_p8 = scmp.ne.s32.totalorder %s1307_s26, 0 }
  0x95   : > { %836 = dma.done.wait (%p1334_p8), %s239_s4, 512  }
  0x96   : > { %838 = vsyncadd (%p1334_p8), %s239_s4, 4294966784  ;;  %s527_s6 = sshll.u32 %s1173_s14, 3 }
  0x97   : > { %s251_s11 = scalar_lea.vmem [#allocation7], %s527_s6 }
  0x98   : > { %840 = dma.done.wait (%p1333_p7), %s239_s4, 128  }
  0x99   : > { %842 = vsyncadd (%p1333_p7), %s239_s4, 4294967168  ;;  %s530_s23 = sshll.u32 %s873_s18, 3  ;;  %s897_s26 = smov 1   ;;  %v529_v3 = vld [vmem:[%s1177_s25 + $0x20] sm:$0xff]  ;;  %v289_v4 = vld [vmem:[%s251_s11] sm:$0xff] }
  0x9a   : > { %s436_s15 = scalar_lea.vmem %s242_s7, %s530_s23 [#allocation5]  ;;  %s898_s8 = smov 127   ;;  %v532_v5 = vld [vmem:[%s1177_s25 + $0x8] sm:$0xff]  ;;  %v297_v6 = vld [vmem:[%s1177_s25] sm:$0xff]  ;;  %v290_v7 = vmul.f32 %v529_v3, %v289_v4  ;;  %v533_v12 = vld [vmem:[%s1177_s25 + $0x10] sm:$0xff] }
  0x9b   : > { %v531_v0 = vld [vmem:[%s436_s15 + $0x7] sm:$0xff]  ;;  %s1335_s9 = sld [smem:[#allocation16_spill]]  ;;  %v540_v20 = vld [vmem:[%s1177_s25 + $0x30] sm:$0xff]  ;;  %s1336_s28 = sld [smem:[#allocation19_spill]] }
  0x9c   : > { %v535_v1 = vld [vmem:[%s436_s15 + $0x8] sm:$0xff]  ;;  %295 = vrot.lane.b32.xlu0 %v531_v0, %s897_s26  ;;  %v303_v10 = vmul.f32 %v532_v5, %v531_v0  ;;  %v536_v14 = vld [vmem:[%s1177_s25 + $0x18] sm:$0xff]  ;;  %s283_s27 = scalar_lea.vmem [#allocation8], %s527_s6  ;;  %s1337_s22 = sld [smem:[#allocation26_spill]] }
  0x9d   : > { %314 = vrot.lane.b32.xlu1 %v535_v1, %s897_s26  ;;  %v539_v2 = vld [vmem:[%s436_s15 + $0x9] sm:$0xff]  ;;  %v541_v24 = vld [vmem:[%s1177_s25 + $0x38] sm:$0xff]  ;;  %s367_s0 = sshll.u32 %s283_s27, 4  ;;  %s899_s24 = smov [#allocation8]   ;;  %s1215_s0 = int_to_ptr.vmem [resolvable:$true] %s367_s0 }
  0x9e   : > { %v537_v16 = vld [vmem:[%s1177_s25 + $0x28] sm:$0xff]  ;;  %v542_v28 = vld [vmem:[%s1177_s25 + $0x40] sm:$0xff]  ;;  %v341_v30 = vmul.f32 %v541_v24, %v539_v2  ;;  %s759_s25 = scalar_lea.vmem %s1215_s0, 128  ;;  %s763_s10 = sshll.u32 %s899_s24, 4  ;;  %s764_s10 = int_to_ptr.vmem [resolvable:$false] %s763_s10 }
  0x9f   : > { %p760_p11 = scmp.ne.s32.totalorder %s1215_s0, %s759_s25  ;;  %s765_s29 = scalar_lea.vmem %s764_s10, 256 }
  0xa0   : > { %305 = vrot.lane.b32.xlu0 %v531_v0, %s898_s8  ;;  %p766_p0 = scmp.lt.s32.totalorder %s1215_s0, %s764_s10  ;;  %p767_p9 = scmp.lt.s32.totalorder %s765_s29, %s759_s25 }
  0xa1   : > { %321 = vrot.lane.b32.xlu1 %v535_v1, %s898_s8  ;;  %s544_s1 = sshll.u32 %s1335_s9, 1  ;;  %p1339_p12 = scmp.ne.s32.totalorder %s1336_s28, 0 }
  0xa2   : > { %s363_s5 = sadd.s32 %s873_s18, %s544_s1  ;;  %s1338_s30 = smov %s1337_s22 }
  0xa3   : > { %s545_s12 = sshll.u32 %s363_s5, 7  ;;  %s352_s18 = scalar_lea.sflag [#allocation4], %s1173_s14 }
  0xa4   : > { %331 = vrot.lane.b32.xlu0 %v539_v2, %s897_s26  ;;  %s1213_s3 = scalar_lea.hbm %s1337_s22, %s545_s12  ;;  %p761_p2 = pnand %p760_p11, %p1339_p12 }
  0xa5   : > { %343 = vrot.lane.b32.xlu1 %v539_v2, %s898_s8  ;;  %p768_p10 = por %p767_p9, %p766_p0 }
  0xa6   : > { %p762_p13 = pneg %p761_p2 }
  0xa8   : > { %p769_p6 = pnand %p768_p10, %p762_p13 }
 0x10e   : > { %v296_v8 = vpop.permute.xlu0 %295 }
 0x10f   : > { %v315_v9 = vpop.permute.xlu1 %314  ;;  %v298_v11 = vmul.f32 %v297_v6, %v296_v8 }
 0x110   : > { %v319_v21 = vmul.f32 %v536_v14, %v315_v9 }
 0x111   : > { %v299_v13 = vadd.f32 %v298_v11, %v290_v7 }
 0x112   : > { %v306_v15 = vpop.permute.xlu0 %305 }
 0x113   : > { %v322_v17 = vpop.permute.xlu1 %321  ;;  %v304_v18 = vadd.f32 %v303_v10, %v299_v13  ;;  %v310_v19 = vmul.f32 %v533_v12, %v306_v15 }
 0x114   : > { %v326_v23 = vmul.f32 %v537_v16, %v322_v17 }
 0x115   : > { %v311_v22 = vadd.f32 %v310_v19, %v304_v18 }
 0x116   : > { %v332_v25 = vpop.permute.xlu0 %331 }
 0x117   : > { %v320_v26 = vadd.f32 %v319_v21, %v311_v22  ;;  %v336_v27 = vmul.f32 %v540_v20, %v332_v25  ;;  %v344_v29 = vpop.permute.xlu1 %343 }
 0x118   : > { %v348_v33 = vmul.f32 %v542_v28, %v344_v29 }
 0x119   : > { %v327_v31 = vadd.f32 %v326_v23, %v320_v26 }
 0x11b   : > { %v337_v32 = vadd.f32 %v336_v27, %v327_v31 }
 0x11d   : > { %v342_v34 = vadd.f32 %v341_v30, %v337_v32 }
 0x11f   : > { %v349_v35 = vadd.f32 %v348_v33, %v342_v34 }
 0x121   : > { %350 = vst [vmem:[%s283_s27] sm:$0xff] %v349_v35 }
 0x122   : > { %772 = shalt.err (!%p769_p6)
}
 0x123   : > { %s773_s14 = scalar_lea.hbm %s1213_s3, 128  ;;  %s777_s6 = scalar_lea.hbm %s1338_s30, 512 }
 0x124   : > { %p774_p3 = scmp.ne.s32.totalorder %s1213_s3, %s773_s14  ;;  %p778_p4 = scmp.lt.u32.totalorder %s1213_s3, %s1338_s30 }
 0x125   : > { %p779_p7 = scmp.lt.u32.totalorder %s777_s6, %s773_s14  ;;  %p781_p11 = scmp.lt.u32.totalorder %s773_s14, %s1213_s3 }
 0x126   : > { %p775_p1 = pnand %p774_p3, %p1339_p12 }
 0x127   : > { %p780_p8 = por %p779_p7, %p778_p4 }
 0x128   : > { %p776_p5 = pneg %p775_p1 }
 0x129   : > { %p782_p2 = por %p781_p11, %p780_p8 }
 0x12b   : > { %p783_p13 = pnand %p782_p2, %p776_p5 }
 0x12d   : > { %786 = shalt.err (!%p783_p13)
}
 0x12e   : > { %558 = dma.vmem_to_hbm [thread:$0]  (%p1339_p12), %s1215_s0, 128, %s1213_s3, %s352_s18  }
 0x12f PF: > { %s1340_s15 = sld [smem:[#allocation17_spill]]  ;;  %s1341_s26 = sld [smem:[#allocation14_spill]] }
 0x130   : > { %s1342_s8 = sld [smem:[#allocation21_spill]] }
 0x135   : > { %p575_p0 = scmp.ge.s32.totalorder %s1340_s15, 2  ;;  %s379_s9 = sand.u32 1, %s1341_s26  }
 0x136   : > { %p1343_p9 = scmp.ne.s32.totalorder %s1342_s8, 0  ;;  %s380_s1 = scalar_lea.sflag [#allocation4], %s379_s9 }
 0x138   : > { %p571_p10 = pnand %p575_p0, %p1343_p9 }
 0x13a   : > { %844 = dma.done.wait (!%p571_p10), %s380_s1, 128  }
 0x13b   : > { %846 = vsyncadd (!%p571_p10), %s380_s1, 4294967168  ;;  %s22_s22 = sadd.s32 1, %s1340_s15   ;;  %s1344_s5 = sld [smem:[#allocation13_spill]] }
 0x13c   : > { %p19_p6 = scmp.ge.s32.totalorder %s22_s22, 6   ;;  %s1345_s14 = sld [smem:[#allocation22_spill]] }
 0x13d   : > { %s1346_s28 = sld [smem:[#allocation15_spill]]  ;;  %s1347_s17 = sld [smem:[#allocation23_spill]] }
 0x13e   : > { %s1348_s27 = sld [smem:[#allocation18_spill]]  ;;  %s1349_s0 = sld [smem:[#allocation20_spill]] }
 0x13f   : > { %s1350_s12 = smov %s853_s13  ;;  %s1352_s15 = smov %s865_s16 }
 0x140   : > { %s1354_s18 = smov %s881_s20  ;;  %s1355_s19 = smov %s885_s21 }
 0x141   : > { %s1351_s13 = smov %s1344_s5  ;;  %21 = sbr.rel (!%p19_p6) target bundleno = 15 (0xf), region = 112 }
 0x143   : > { %s1353_s16 = smov %s1346_s28 }
 0x144   : > { %s1356_s20 = smov %s1348_s27  ;;  %s1357_s21 = smov %s1349_s0 }
 0x148   :  { %385 = vsyncpa [#allocation3], 1 }
 0x149   :  { %387 = vsyncpa [#allocation3 + $0x1], 1 }
 0x14a   :  { %388 = vsyncpa [#allocation6], 1 }
 0x14b   :  { %390 = vsyncpa [#allocation6 + $0x1], 1 }
 0x14c   :  { %391 = vsyncpa [#allocation4], 1 }
 0x14d   :  { %393 = vsyncpa [#allocation4 + $0x1], 1 }

</bundles_post_ra>
